<compile_context>
chip_gen: v7x
topology: tpu7x:2x2x1
jax: 0.10.0
libtpu: 0.0.40
codegen_flags: <defaults>
</compile_context>

<pallas_src>
import functools
import math

import jax
import jax.numpy as jnp
from jax.experimental import pallas as pl
from jax.experimental.pallas import tpu as pltpu


def hopfield_kernel(r_ref, y_ref, wq_ref, bq_ref, wkv_ref, bkv_ref,
                    wo_ref, bo_ref, m_ref, mt_ref, o_ref,
                    *, step_size, scale, C):
    # One batch element per grid step.
    r = r_ref[0]                       # (1, C)  query token
    y = y_ref[0]                       # (S, C)  memory tokens

    # Projections: MXU matmuls in the input dtype, f32 accumulation.
    q = jnp.dot(r, wq_ref[...], preferred_element_type=jnp.float32) + bq_ref[...]     # (1, C)
    kv = jnp.dot(y, wkv_ref[...], preferred_element_type=jnp.float32) + bkv_ref[...]  # (S, 2C)
    k = kv[:, :C]                      # (S, C)
    v = kv[:, C:]                      # (S, C)  == value_projection(key_projection(Y))

    m = m_ref[...]                     # (C, H) 0/1 head block-indicator (f32)
    mt = mt_ref[...]                   # (H, C)

    for _ in range(step_size):
        # scores[s, h] = sum_d q[h*hd+d] * k[s, h*hd+d]   (scale folded into q: tiny (1,C) mul)
        prod = k * (q * scale)                                               # (S, C)
        scores = jnp.dot(prod, m, preferred_element_type=jnp.float32)        # (S, H)
        # softmax over the memory axis S (axis 0).  (S,H) is tiny, so exact division is
        # used; pl.reciprocal(approx=True) would buy nothing here but cost accuracy.
        smax = jnp.max(scores, axis=0, keepdims=True)                        # (1, H)
        e = jnp.exp(scores - smax)
        a = e / jnp.sum(e, axis=0, keepdims=True)                            # (S, H)
        # new queries: q[h*hd+d] = sum_s a[s,h] * v[s, h*hd+d]
        a_exp = jnp.dot(a, mt, preferred_element_type=jnp.float32)           # (S, C)
        q = jnp.sum(a_exp * v, axis=0, keepdims=True)                        # (1, C)

    out = jnp.dot(q, wo_ref[...], preferred_element_type=jnp.float32) + bo_ref[...]   # (1, C)
    o_ref[0] = out.astype(o_ref.dtype)


def hopfield_layer(x, wq, bq, wk, bk, wv, bv, wo, bo,
                   *, num_heads=8, step_size=1, qk_scale=None):
    B, N, C = x.shape
    H = num_heads
    assert C % H == 0 and N >= 2
    hd = C // H
    S = N - 1
    scale = qk_scale if qk_scale is not None else 1.0 / math.sqrt(hd)

    # Split query token / memory tokens outside the kernel (cheap XLA slices).
    r = x[:, :1, :]                                 # (B, 1, C)
    y = x[:, 1:, :]                                 # (B, S, C)

    # One-time algebraic fusion of key+value projections into a single (C, 2C) weight.
    wkv = jnp.concatenate([wk, wk @ wv], axis=1)                     # (C, 2C)
    bkv = jnp.concatenate([bk, bk @ wv + bv]).reshape(1, 2 * C)      # (1, 2C)
    bq2 = bq.reshape(1, C)
    bo2 = bo.reshape(1, C)

    # 0/1 head block-indicator matrix (and transpose) for lane-dense head mixing.
    head_of_col = jnp.arange(C) // hd
    m = (head_of_col[:, None] == jnp.arange(H)[None, :]).astype(jnp.float32)  # (C, H)
    mt = m.T                                                                  # (H, C)

    kernel = functools.partial(hopfield_kernel, step_size=step_size,
                               scale=scale, C=C)
    full2 = lambda b: (0, 0)
    return pl.pallas_call(
        kernel,
        out_shape=jax.ShapeDtypeStruct((B, 1, C), x.dtype),
        grid_spec=pltpu.PrefetchScalarGridSpec(
            num_scalar_prefetch=0,
            grid=(B,),
            in_specs=[
                pl.BlockSpec((1, 1, C), lambda b: (b, 0, 0)),   # R (query token)
                pl.BlockSpec((1, S, C), lambda b: (b, 0, 0)),   # Y (memories)
                pl.BlockSpec((C, C), full2),                    # Wq
                pl.BlockSpec((1, C), full2),                    # bq
                pl.BlockSpec((C, 2 * C), full2),                # [Wk | Wk@Wv]
                pl.BlockSpec((1, 2 * C), full2),                # [bk | bk@Wv + bv]
                pl.BlockSpec((C, C), full2),                    # Wo
                pl.BlockSpec((1, C), full2),                    # bo
                pl.BlockSpec((C, H), full2),                    # M
                pl.BlockSpec((H, C), full2),                    # M^T
            ],
            out_specs=pl.BlockSpec((1, 1, C), lambda b: (b, 0, 0)),
        ),
        compiler_params=pltpu.CompilerParams(
            dimension_semantics=("parallel",)),
    )(r, y, wq, bq2, wkv, bkv, wo, bo2, m, mt)


def hopfield_ref(x, wq, bq, wk, bk, wv, bv, wo, bo,
                 *, num_heads=8, step_size=1, qk_scale=None):
    """Pure-JAX reference mirroring the PyTorch forward."""
    B, N, C = x.shape
    H = num_heads
    hd = C // H
    R = x[:, :1, :]
    Y = x[:, 1:, :]
    q = (R @ wq + bq).reshape(B, 1, H, hd)
    k_flat = Y @ wk + bk
    v = (k_flat @ wv + bv).reshape(B, N - 1, H, hd)
    k = k_flat.reshape(B, N - 1, H, hd)
    for _ in range(step_size):
        E = q.shape[-1]
        scale = qk_scale if qk_scale is not None else 1.0 / math.sqrt(E)
        scores = jnp.einsum('blhe,bshe->bhls', q, k)
        A = jax.nn.softmax(scale * scores, axis=-1)
        q = jnp.einsum('bhls,bshd->blhd', A, v)
    out = q.reshape(B, 1, C)
    return out @ wo + bo


if __name__ == "__main__":
    B, N, dim = 2, 8, 32
    num_heads, step_size = 8, 1

    key = jax.random.PRNGKey(0)
    keys = jax.random.split(key, 9)
    std = 1.0 / math.sqrt(dim)
    x = jax.random.normal(keys[0], (B, N, dim), dtype=jnp.float32)
    wq = jax.random.normal(keys[1], (dim, dim), dtype=jnp.float32) * std
    bq = jax.random.normal(keys[2], (dim,), dtype=jnp.float32) * std
    wk = jax.random.normal(keys[3], (dim, dim), dtype=jnp.float32) * std
    bk = jax.random.normal(keys[4], (dim,), dtype=jnp.float32) * std
    wv = jax.random.normal(keys[5], (dim, dim), dtype=jnp.float32) * std
    bv = jax.random.normal(keys[6], (dim,), dtype=jnp.float32) * std
    wo = jax.random.normal(keys[7], (dim, dim), dtype=jnp.float32) * std
    bo = jax.random.normal(keys[8], (dim,), dtype=jnp.float32) * std

    out = hopfield_layer(x, wq, bq, wk, bk, wv, bv, wo, bo,
                         num_heads=num_heads, step_size=step_size)
    out = jax.block_until_ready(out)

    ref = hopfield_ref(x, wq, bq, wk, bk, wv, bv, wo, bo,
                       num_heads=num_heads, step_size=step_size)
    assert out.shape == (B, 1, dim)
    assert jnp.allclose(out, ref, atol=2e-4, rtol=2e-4), "mismatch vs reference"
    print("KERNEL_OK")
</pallas_src>

<mosaic_0001>
module attributes {stable_mosaic.version = 11 : i64} {
  func.func @hopfield_kernel(%arg0: i32, %arg1: memref<1x1x32xf32, #tpu.memory_space<vmem>>, %arg2: memref<1x7x32xf32, #tpu.memory_space<vmem>>, %arg3: memref<32x32xf32, #tpu.memory_space<vmem>>, %arg4: memref<1x32xf32, #tpu.memory_space<vmem>>, %arg5: memref<32x64xf32, #tpu.memory_space<vmem>>, %arg6: memref<1x64xf32, #tpu.memory_space<vmem>>, %arg7: memref<32x32xf32, #tpu.memory_space<vmem>>, %arg8: memref<1x32xf32, #tpu.memory_space<vmem>>, %arg9: memref<32x8xf32, #tpu.memory_space<vmem>>, %arg10: memref<8x32xf32, #tpu.memory_space<vmem>>, %arg11: memref<1x1x32xf32, #tpu.memory_space<vmem>>) attributes {dimension_semantics = [#tpu.dimension_semantics<parallel>], iteration_bounds = array<i64: 2>, scalar_prefetch = 0 : i64, scratch_operands = 0 : i64, tpu.core_type = #tpu.core_type<tc>, window_params = [{transform_indices = @transform_0, window_bounds = array<i64: 1, 1, 32>}, {transform_indices = @transform_1, window_bounds = array<i64: 1, 7, 32>}, {pipeline_mode = #tpu.pipeline_mode<synchronous>, transform_indices = @transform_2, window_bounds = array<i64: 32, 32>}, {pipeline_mode = #tpu.pipeline_mode<synchronous>, transform_indices = @transform_3, window_bounds = array<i64: 1, 32>}, {pipeline_mode = #tpu.pipeline_mode<synchronous>, transform_indices = @transform_4, window_bounds = array<i64: 32, 64>}, {pipeline_mode = #tpu.pipeline_mode<synchronous>, transform_indices = @transform_5, window_bounds = array<i64: 1, 64>}, {pipeline_mode = #tpu.pipeline_mode<synchronous>, transform_indices = @transform_6, window_bounds = array<i64: 32, 32>}, {pipeline_mode = #tpu.pipeline_mode<synchronous>, transform_indices = @transform_7, window_bounds = array<i64: 1, 32>}, {pipeline_mode = #tpu.pipeline_mode<synchronous>, transform_indices = @transform_8, window_bounds = array<i64: 32, 8>}, {pipeline_mode = #tpu.pipeline_mode<synchronous>, transform_indices = @transform_9, window_bounds = array<i64: 8, 32>}, {transform_indices = @transform_10, window_bounds = array<i64: 1, 1, 32>}]} {
    %c0 = arith.constant 0 : index
    %c0_0 = arith.constant 0 : index
    %c0_1 = arith.constant 0 : index
    %0 = vector.load %arg1[%c0, %c0_0, %c0_1] : memref<1x1x32xf32, #tpu.memory_space<vmem>>, vector<1x1x32xf32>
    %1 = vector.shape_cast %0 : vector<1x1x32xf32> to vector<1x32xf32>
    %c0_2 = arith.constant 0 : index
    %c0_3 = arith.constant 0 : index
    %c0_4 = arith.constant 0 : index
    %2 = vector.load %arg2[%c0_2, %c0_3, %c0_4] : memref<1x7x32xf32, #tpu.memory_space<vmem>>, vector<1x7x32xf32>
    %3 = vector.shape_cast %2 : vector<1x7x32xf32> to vector<7x32xf32>
    %c0_5 = arith.constant 0 : index
    %c0_6 = arith.constant 0 : index
    %4 = vector.load %arg3[%c0_5, %c0_6] : memref<32x32xf32, #tpu.memory_space<vmem>>, vector<32x32xf32>
    %cst = arith.constant dense<0.000000e+00> : vector<1x32xf32>
    %5 = tpu.matmul %1, %4, %cst {dimension_numbers = #tpu.dot_dimension_numbers<[1], [0], [0], [1], [0, 0, 1, 1], [], []>} : vector<1x32xf32>, vector<32x32xf32>, vector<1x32xf32> -> vector<1x32xf32>
    %c0_7 = arith.constant 0 : index
    %c0_8 = arith.constant 0 : index
    %6 = vector.load %arg4[%c0_7, %c0_8] : memref<1x32xf32, #tpu.memory_space<vmem>>, vector<1x32xf32>
    %7 = arith.addf %5, %6 : vector<1x32xf32>
    %c0_9 = arith.constant 0 : index
    %c0_10 = arith.constant 0 : index
    %8 = vector.load %arg5[%c0_9, %c0_10] : memref<32x64xf32, #tpu.memory_space<vmem>>, vector<32x64xf32>
    %cst_11 = arith.constant dense<0.000000e+00> : vector<7x64xf32>
    %9 = tpu.matmul %3, %8, %cst_11 {dimension_numbers = #tpu.dot_dimension_numbers<[1], [0], [0], [1], [0, 0, 1, 1], [], []>} : vector<7x32xf32>, vector<32x64xf32>, vector<7x64xf32> -> vector<7x64xf32>
    %c0_12 = arith.constant 0 : index
    %c0_13 = arith.constant 0 : index
    %10 = vector.load %arg6[%c0_12, %c0_13] : memref<1x64xf32, #tpu.memory_space<vmem>>, vector<1x64xf32>
    %11 = vector.broadcast %10 : vector<1x64xf32> to vector<7x64xf32>
    %12 = arith.addf %9, %11 : vector<7x64xf32>
    %13 = vector.extract_strided_slice %12 {offsets = [0, 0], sizes = [7, 32], strides = [1, 1]} : vector<7x64xf32> to vector<7x32xf32>
    %14 = vector.extract_strided_slice %12 {offsets = [0, 32], sizes = [7, 32], strides = [1, 1]} : vector<7x64xf32> to vector<7x32xf32>
    %c0_14 = arith.constant 0 : index
    %c0_15 = arith.constant 0 : index
    %15 = vector.load %arg9[%c0_14, %c0_15] : memref<32x8xf32, #tpu.memory_space<vmem>>, vector<32x8xf32>
    %c0_16 = arith.constant 0 : index
    %c0_17 = arith.constant 0 : index
    %16 = vector.load %arg10[%c0_16, %c0_17] : memref<8x32xf32, #tpu.memory_space<vmem>>, vector<8x32xf32>
    %cst_18 = arith.constant 5.000000e-01 : f32
    %17 = vector.broadcast %cst_18 : f32 to vector<1x32xf32>
    %18 = arith.mulf %7, %17 : vector<1x32xf32>
    %19 = vector.broadcast %18 : vector<1x32xf32> to vector<7x32xf32>
    %20 = arith.mulf %13, %19 : vector<7x32xf32>
    %cst_19 = arith.constant dense<0.000000e+00> : vector<7x8xf32>
    %21 = tpu.matmul %20, %15, %cst_19 {dimension_numbers = #tpu.dot_dimension_numbers<[1], [0], [0], [1], [0, 0, 1, 1], [], []>} : vector<7x32xf32>, vector<32x8xf32>, vector<7x8xf32> -> vector<7x8xf32>
    %cst_20 = arith.constant dense<0xFF800000> : vector<8xf32>
    %22 = vector.multi_reduction <maximumf>, %21, %cst_20 [0] : vector<7x8xf32> to vector<8xf32>
    %23 = vector.shape_cast %22 : vector<8xf32> to vector<1x8xf32>
    %24 = vector.broadcast %23 : vector<1x8xf32> to vector<7x8xf32>
    %25 = arith.subf %21, %24 : vector<7x8xf32>
    %26 = math.exp %25 : vector<7x8xf32>
    %cst_21 = arith.constant dense<0.000000e+00> : vector<8xf32>
    %27 = vector.multi_reduction <add>, %26, %cst_21 [0] : vector<7x8xf32> to vector<8xf32>
    %28 = vector.shape_cast %27 : vector<8xf32> to vector<1x8xf32>
    %29 = vector.broadcast %28 : vector<1x8xf32> to vector<7x8xf32>
    %30 = arith.divf %26, %29 : vector<7x8xf32>
    %cst_22 = arith.constant dense<0.000000e+00> : vector<7x32xf32>
    %31 = tpu.matmul %30, %16, %cst_22 {dimension_numbers = #tpu.dot_dimension_numbers<[1], [0], [0], [1], [0, 0, 1, 1], [], []>} : vector<7x8xf32>, vector<8x32xf32>, vector<7x32xf32> -> vector<7x32xf32>
    %32 = arith.mulf %31, %14 : vector<7x32xf32>
    %cst_23 = arith.constant dense<0.000000e+00> : vector<32xf32>
    %33 = vector.multi_reduction <add>, %32, %cst_23 [0] : vector<7x32xf32> to vector<32xf32>
    %34 = vector.shape_cast %33 : vector<32xf32> to vector<1x32xf32>
    %c0_24 = arith.constant 0 : index
    %c0_25 = arith.constant 0 : index
    %35 = vector.load %arg7[%c0_24, %c0_25] : memref<32x32xf32, #tpu.memory_space<vmem>>, vector<32x32xf32>
    %cst_26 = arith.constant dense<0.000000e+00> : vector<1x32xf32>
    %36 = tpu.matmul %34, %35, %cst_26 {dimension_numbers = #tpu.dot_dimension_numbers<[1], [0], [0], [1], [0, 0, 1, 1], [], []>} : vector<1x32xf32>, vector<32x32xf32>, vector<1x32xf32> -> vector<1x32xf32>
    %c0_27 = arith.constant 0 : index
    %c0_28 = arith.constant 0 : index
    %37 = vector.load %arg8[%c0_27, %c0_28] : memref<1x32xf32, #tpu.memory_space<vmem>>, vector<1x32xf32>
    %38 = arith.addf %36, %37 : vector<1x32xf32>
    %c0_29 = arith.constant 0 : index
    %c0_30 = arith.constant 0 : index
    %c0_31 = arith.constant 0 : index
    %39 = vector.load %arg11[%c0_29, %c0_30, %c0_31] : memref<1x1x32xf32, #tpu.memory_space<vmem>>, vector<1x1x32xf32>
    %40 = vector.shape_cast %39 : vector<1x1x32xf32> to vector<1x32xf32>
    %41 = vector.shape_cast %38 : vector<1x32xf32> to vector<1x1x32xf32>
    tpu.vector_store %arg11[%c0_29, %c0_30, %c0_31], %41 {strides = array<i32>} : memref<1x1x32xf32, #tpu.memory_space<vmem>>, vector<1x1x32xf32>,
    return
  }
  func.func @transform_0(%arg0: i32) -> (i32, i32, i32) {
    %c0_i32 = arith.constant 0 : i32
    %c0_i32_0 = arith.constant 0 : i32
    %c0_i32_1 = arith.constant 0 : i32
    return %arg0, %c0_i32, %c0_i32_0 : i32, i32, i32
  }
  func.func @transform_1(%arg0: i32) -> (i32, i32, i32) {
    %c0_i32 = arith.constant 0 : i32
    %c0_i32_0 = arith.constant 0 : i32
    %c0_i32_1 = arith.constant 0 : i32
    return %arg0, %c0_i32, %c0_i32_0 : i32, i32, i32
  }
  func.func @transform_2(%arg0: i32) -> (i32, i32) {
    %c0_i32 = arith.constant 0 : i32
    %c0_i32_0 = arith.constant 0 : i32
    %c0_i32_1 = arith.constant 0 : i32
    return %c0_i32, %c0_i32_0 : i32, i32
  }
  func.func @transform_3(%arg0: i32) -> (i32, i32) {
    %c0_i32 = arith.constant 0 : i32
    %c0_i32_0 = arith.constant 0 : i32
    %c0_i32_1 = arith.constant 0 : i32
    return %c0_i32, %c0_i32_0 : i32, i32
  }
  func.func @transform_4(%arg0: i32) -> (i32, i32) {
    %c0_i32 = arith.constant 0 : i32
    %c0_i32_0 = arith.constant 0 : i32
    %c0_i32_1 = arith.constant 0 : i32
    return %c0_i32, %c0_i32_0 : i32, i32
  }
  func.func @transform_5(%arg0: i32) -> (i32, i32) {
    %c0_i32 = arith.constant 0 : i32
    %c0_i32_0 = arith.constant 0 : i32
    %c0_i32_1 = arith.constant 0 : i32
    return %c0_i32, %c0_i32_0 : i32, i32
  }
  func.func @transform_6(%arg0: i32) -> (i32, i32) {
    %c0_i32 = arith.constant 0 : i32
    %c0_i32_0 = arith.constant 0 : i32
    %c0_i32_1 = arith.constant 0 : i32
    return %c0_i32, %c0_i32_0 : i32, i32
  }
  func.func @transform_7(%arg0: i32) -> (i32, i32) {
    %c0_i32 = arith.constant 0 : i32
    %c0_i32_0 = arith.constant 0 : i32
    %c0_i32_1 = arith.constant 0 : i32
    return %c0_i32, %c0_i32_0 : i32, i32
  }
  func.func @transform_8(%arg0: i32) -> (i32, i32) {
    %c0_i32 = arith.constant 0 : i32
    %c0_i32_0 = arith.constant 0 : i32
    %c0_i32_1 = arith.constant 0 : i32
    return %c0_i32, %c0_i32_0 : i32, i32
  }
  func.func @transform_9(%arg0: i32) -> (i32, i32) {
    %c0_i32 = arith.constant 0 : i32
    %c0_i32_0 = arith.constant 0 : i32
    %c0_i32_1 = arith.constant 0 : i32
    return %c0_i32, %c0_i32_0 : i32, i32
  }
  func.func @transform_10(%arg0: i32) -> (i32, i32, i32) {
    %c0_i32 = arith.constant 0 : i32
    %c0_i32_0 = arith.constant 0 : i32
    %c0_i32_1 = arith.constant 0 : i32
    return %arg0, %c0_i32, %c0_i32_0 : i32, i32, i32
  }
}

</mosaic_0001>

<bundles_post_ra>
// kernel: tpu_custom_call.1
= control target key start
LH: loop header
LB: loop body
LE: loop exit
PB: predicated region body
PF: predicated region fallthrough
CT: control target
= control target key end

     0   :  { %15 = vsyncpa [#allocation3], 0  ;;  %s1585_s0 = inlined_call_operand.hbm [shape: f32[2,1,32], index: 0, kind: input, shape index: {}]   ;;  %s1586_s1 = inlined_call_operand.vmem [shape: f32[2,7,32], index: 1, kind: input, shape index: {}]   ;;  %s1587_s2 = inlined_call_operand.vmem [shape: f32[32,32], index: 2, kind: input, shape index: {}]   ;;  %s1588_s3 = inlined_call_operand.vmem [shape: f32[1,32], index: 3, kind: input, shape index: {}]   ;;  %s1589_s4 = inlined_call_operand.vmem [shape: f32[32,64], index: 4, kind: input, shape index: {}]   ;;  %s1590_s5 = inlined_call_operand.vmem [shape: f32[1,64], index: 5, kind: input, shape index: {}]   ;;  %s1591_s6 = inlined_call_operand.hbm [shape: f32[32,32], index: 6, kind: input, shape index: {}]   ;;  %s1592_s7 = inlined_call_operand.vmem [shape: f32[1,32], index: 7, kind: input, shape index: {}]   ;;  %s1593_s8 = inlined_call_operand.vmem [shape: f32[32,8], index: 8, kind: input, shape index: {}]   ;;  %s1594_s9 = inlined_call_operand.vmem [shape: f32[8,32], index: 9, kind: input, shape index: {}]   ;;  %s1595_s10 = inlined_call_operand.hbm [shape: f32[2,1,32], index: 10, kind: output, shape index: {}]  }
   0x1   :  { %17 = vsyncpa [#allocation3 + $0x1], 0 }
   0x2   :  { %18 = vsyncpa [#allocation6], 0 }
   0x3   :  { %19 = vsyncpa [#allocation4], 0 }
   0x4   :  { %21 = vsyncpa [#allocation4 + $0x1], 0  ;;  %s1310_s13 = smov 0   ;;  %s1312_s14 = smov 0  }
   0x5   :  { %s1314_s15 = smov 0   ;;  %s1316_s16 = smov 0  }
   0x6 LB: > { %1603 = sst [smem:[#allocation11_spill]] %s1232_s13  ;;  %s1331_s17 = sadd.s32 4294967295, %s1244_s16   ;;  %s1244_s16 = sphi %s1316_s16, %s1621_s16   ;;  %s1240_s15 = sphi %s1314_s15, %s1624_s15   ;;  %s1236_s14 = sphi %s1312_s14, %s1623_s14   ;;  %s1232_s13 = sphi %s1310_s13, %s1622_s13  }
   0x7   : > { %s937_s18 = sadd.s32 4294967294, %s1244_s16   ;;  %p47_p0 = scmp.ne.s32.totalorder %s1236_s14, %s1232_s13 }
   0x8   : > { %p1598_p1 = scmp.eq.s32.totalorder %s1331_s17, 0  ;;  %p271_p3 = scmp.eq.s32.totalorder %s937_s18, 1 }
   0x9   : > { %p938_p5 = scmp.ge.s32.totalorder %s1244_s16, 1  ;;  %p278_p7 = scmp.lt.s32.totalorder %s1244_s16, 3 }
   0xa   : > { %p1340_p4 = por %p1598_p1, %p47_p0  ;;  %p1345_p6 = por %p271_p3, %p47_p0 }
   0xb   : > { %p1350_p8 = pnand %p938_p5, %p278_p7  ;;  %s1246_s22 = smov [#allocation5]  }
   0xc   : > { %s1604_s19 = scalar_select %p1340_p4, 1, 0 }
   0xd   : > { %s1605_s20 = scalar_select %p1345_p6, 1, 0 }
   0xe   : > { %s1607_s21 = scalar_select %p1350_p8, 1, 0 }
   0xf   : > { %1606 = sst [smem:[#allocation12_spill]] %s1605_s20  ;;  %s302_s23 = sshll.u32 %s1246_s22, 4  ;;  %s1354_s23 = int_to_ptr.vmem [resolvable:$true] %s302_s23 }
  0x10   : > { %p1057_p9 = pneg %p1350_p8  ;;  %s1366_s25 = sadd.s32 1, %s1244_s16  }
  0x11   : > { %1609 = sst [smem:[#allocation13_spill]] %s1366_s25  ;;  %s34_s26 = sadd.s32 1, %s1240_s15 }
  0x12   : > { %p1361_p11 = pnand %p1057_p9, %p1598_p1  ;;  %s31_s27 = ssub.s32 %s1244_s16, %s1366_s25 }
  0x13   : > { %s1116_s30 = scalar_lea.hbm %s1591_s6, 512 }
  0x14   : > { %p1117_p12 = scmp.ne.s32.totalorder %s1591_s6, %s1116_s30  ;;  %p1118_p13 = pneg %p1361_p11 }
  0x15   : > { %p1123_p5 = scmp.lt.u32.totalorder %s1116_s30, %s1591_s6 }
  0x16   : > { %p1119_p0 = pnand %p1118_p13, %p1117_p12 }
  0x18   : > { %p1120_p3 = pneg %p1119_p0 }
  0x1a   : > { %p1125_p7 = pnand %p1123_p5, %p1120_p3 }
  0x1c   : > { %1128 = shalt.err (!%p1125_p7)
}
  0x1d   : > { %s1129_s25 = scalar_lea.vmem %s1354_s23, 512  ;;  %p1137_p2 = scmp.lt.s32.totalorder %s1354_s23, %s1354_s23 }
  0x1e   : > { %p1130_p9 = scmp.ne.s32.totalorder %s1354_s23, %s1129_s25  ;;  %p1138_p6 = scmp.lt.s32.totalorder %s1129_s25, %s1129_s25 }
  0x20   : > { %p1132_p10 = pnand %p1130_p9, %p1118_p13  ;;  %p1139_p4 = por %p1138_p6, %p1137_p2 }
  0x22   : > { %p1133_p1 = pneg %p1132_p10 }
  0x24   : > { %p1140_p8 = pnand %p1139_p4, %p1133_p1 }
  0x26   : > { %1143 = shalt.err (!%p1140_p8)
}
  0x27   : > { %s1247_s28 = smov 128   ;;  %s1248_s29 = smov 8  }
  0x28   : > { %1060 = dma.hbm_to_vmem [thread:$0]  (!%p1361_p11), %s1591_s6, 512, %s1354_s23, [#allocation6], %s1247_s28, %s1247_s28, %s1248_s29  }
  0x29   : > { %p32_p2 = scmp.eq.s32.totalorder %s31_s27, 0  ;;  %p41_p1 = scmp.ne.s32.totalorder %s1240_s15, %s1236_s14 }
  0x2a   : > { %p42_p4 = scmp.eq.s32.totalorder %s1244_s16, 0  ;;  %p1070_p6 = scmp.lt.s32.totalorder %s1244_s16, 2 }
  0x2b   : > { %s1397_s25 = scalar_select %p32_p2, %s1240_s15, %s34_s26  }
  0x2c   : > { %p43_p8 = por %p42_p4, %p41_p1  ;;  %p1610_p10 = scmp.eq.s32.totalorder %s1331_s17, 1 }
  0x2d   : > { %s325_s18 = sand.u32 1, %s1240_s15   ;;  %s941_s22 = sshll.u32 %s1244_s16, 4 }
  0x2e   : > { %p1401_p12 = por %p1610_p10, %p41_p1  ;;  %s1410_s13 = scalar_lea.hbm %s1585_s0, %s941_s22 }
  0x2f   : > { %s328_s23 = scalar_lea.vmem [#allocation2], %s325_s18  ;;  %p1414_p11 = pnand %p1070_p6, %p43_p8 }
  0x30   : > { %s335_s26 = sshll.u32 %s328_s23, 4  ;;  %s326_s28 = scalar_lea.sflag [#allocation3], %s325_s18  ;;  %s1412_s26 = int_to_ptr.vmem [resolvable:$true] %s335_s26 }
  0x31   : > { %s1144_s29 = scalar_lea.hbm %s1410_s13, 16  ;;  %p1146_p0 = pneg %p1414_p11 }
  0x32   : > { %p1145_p13 = scmp.ne.s32.totalorder %s1410_s13, %s1144_s29  ;;  %s1149_s11 = scalar_lea.hbm %s1585_s0, 32 }
  0x33   : > { %p1150_p7 = scmp.lt.u32.totalorder %s1410_s13, %s1585_s0  ;;  %p1151_p9 = scmp.lt.u32.totalorder %s1149_s11, %s1144_s29 }
  0x34   : > { %p1147_p3 = pnand %p1146_p0, %p1145_p13  ;;  %p1153_p1 = scmp.lt.u32.totalorder %s1144_s29, %s1410_s13 }
  0x35   : > { %p1152_p2 = por %p1151_p9, %p1150_p7 }
  0x36   : > { %p1148_p5 = pneg %p1147_p3 }
  0x37   : > { %p1154_p4 = por %p1153_p1, %p1152_p2 }
  0x39   : > { %p1155_p6 = pnand %p1154_p4, %p1148_p5 }
  0x3b   : > { %1158 = shalt.err (!%p1155_p6)
}
  0x3c   : > { %s1159_s18 = scalar_lea.vmem %s1412_s26, 16  ;;  %s1249_s23 = smov [#allocation2]  }
  0x3d   : > { %p1160_p8 = scmp.ne.s32.totalorder %s1412_s26, %s1159_s18  ;;  %s1164_s20 = sshll.u32 %s1249_s23, 4  ;;  %s1165_s20 = int_to_ptr.vmem [resolvable:$false] %s1164_s20 }
  0x3e   : > { %s1166_s30 = scalar_lea.vmem %s1165_s20, 32  ;;  %p1167_p3 = scmp.lt.s32.totalorder %s1412_s26, %s1165_s20 }
  0x3f   : > { %p1162_p10 = pnand %p1160_p8, %p1146_p0  ;;  %p1168_p7 = scmp.lt.s32.totalorder %s1166_s30, %s1159_s18 }
  0x41   : > { %p1163_p13 = pneg %p1162_p10  ;;  %p1169_p9 = por %p1168_p7, %p1167_p3 }
  0x43   : > { %p1170_p2 = pnand %p1169_p9, %p1163_p13 }
  0x45   : > { %1173 = shalt.err (!%p1170_p2)
}
  0x46   : > { %1064 = dma.hbm_to_vmem [thread:$0]  (!%p1414_p11), %s1410_s13, 16, %s1412_s26, %s326_s28  }
  0x47   : > { %p1613_p5 = scmp.ne.s32.totalorder %s1607_s21, 0 }
  0x48   : > { %s1446_s29 = sand.u32 (!%p1613_p5), 1, %s1236_s14   ;;  %p1614_p0 = scmp.ne.s32.totalorder (!%p1613_p5), %s1604_s19, 0 }
  0x49   : > { %351 = sbr.rel (%p1613_p5) target bundleno = 1035 (0x40b), region = 60  ;;  %s354_s11 = scalar_lea.sflag (!%p1613_p5), [#allocation3], %s1446_s29 }
  0x4a   : > { %s356_s22 = scalar_lea.vmem (!%p1613_p5), [#allocation2], %s1446_s29 }
  0x50   : > { %1219 = dma.done.wait (%p1614_p0), %s354_s11, 16  }
  0x51   : > { %1221 = vsyncadd (%p1614_p0), %s354_s11, 4294967280  ;;  %p1615_p1 = scmp.eq.s32.totalorder %s1331_s17, 0 }
  0x53   : > { %1223 = dma.done.wait (%p1615_p1), [#allocation6], 512   ;;  %p1616_p11 = pmov %p1615_p1 }
  0x54   : > { %v1250_v0 = vmov 0.0|0.0   ;;  %p399_p4 = scmp.lt.s32.totalorder %s1331_s17, 1  ;;  %vm1251_vm0 = vmmov 0   ;;  %v1252_v1 = vmov 0.0   ;;  %v405_v2 = vld [vmem:[%s1587_s2] sm:$0xff]  ;;  %v406_v3 = vld [vmem:[%s1587_s2 + $0x8] sm:$0xff]  ;;  %v574_v22 = vlaneseq }
  0x55   : > { %1225 = vsyncadd (%p1616_p11), [#allocation6], 4294966784  ;;  %1025 = vmatprep.subr.bf16.mxu0 %v1250_v0  ;;  %1031 = vmatprep.subr.bf16.mxu1 %v1250_v0  ;;  %v484_v4 = vld [vmem:[%s1589_s4] sm:$0xff]  ;;  %v1026_v5 = vpack.c.bf16 %v406_v3, %v405_v2  ;;  %v485_v6 = vld [vmem:[%s1589_s4 + $0x8] sm:$0xff]  ;;  %vm410_vm1 = vcmask 261120   ;;  %vm652_vm2 = vcmask 63488  }
  0x56   : > { %984 = vmatprep.mubr.msk.f32.mxu0 %vm1251_vm0, %v1252_v1  ;;  %995 = vmatprep.mubr.msk.f32.mxu1 %vm1251_vm0, %v1252_v1  ;;  %s400_s13 = scalar_select %p399_p4, %s1331_s17, 1  ;;  %v407_v7 = vld [vmem:[%s1587_s2 + $0x10] sm:$0xff]  ;;  %v408_v8 = vld [vmem:[%s1587_s2 + $0x18] sm:$0xff]  ;;  %v1032_v9 = vpack.c.bf16 %v485_v6, %v484_v4  ;;  %v403_v14 = vld [vmem:[%s356_s22] sm:$0x1]  ;;  %v575_v23 = vshrl.u32 %v574_v22, 7 }
  0x57   : > { %v486_v10 = vld [vmem:[%s1589_s4 + $0x10] sm:$0xff]  ;;  %v487_v11 = vld [vmem:[%s1589_s4 + $0x18] sm:$0xff]  ;;  %1027 = vmatpush3.bf16.msra.mxu0 %v1026_v5  ;;  %v1029_v12 = vpack.c.bf16 %v408_v8, %v407_v7  ;;  %v568_v16 = vld [vmem:[%s1593_s8] sm:$0xff]  ;;  %vm672_vm3 = vcmask 64512   ;;  %vm751_vm4 = vcmask 260096   ;;  %s951_s19 = sshll.u32 %s1331_s17, 4 }
  0x58   : > { %s944_s24 = sshll.u32 %s400_s13, 3  ;;  %1028 = vmatprep.subr.bf16.mxu0 %v1250_v0  ;;  %1033 = vmatpush3.bf16.msra.mxu1 %v1032_v9  ;;  %v1035_v13 = vpack.c.bf16 %v487_v11, %v486_v10  ;;  %v569_v17 = vld [vmem:[%s1593_s8 + $0x8] sm:$0xff]  ;;  %v570_v19 = vld [vmem:[%s1593_s8 + $0x10] sm:$0xff]  ;;  %v571_v20 = vld [vmem:[%s1593_s8 + $0x18] sm:$0xff]  ;;  %v576_v28 = vsub.s32 0, %v575_v23  ;;  %s398_s21 = scalar_lea.vmem [#allocation7], %s1446_s29 }
  0x59   : > { %1034 = vmatprep.subr.bf16.mxu1 %v1250_v0  ;;  %s402_s20 = scalar_lea.vmem %s1586_s1, %s944_s24  ;;  %v1038_v18 = vpack.c.bf16 %v569_v17, %v568_v16  ;;  %v1041_v21 = vpack.c.bf16 %v571_v20, %v570_v19  ;;  %v409_v24 = vld [vmem:[%s1588_s3] sm:$0x1]  ;;  %v759_v58 = vld [vmem:[#allocation5] sm:$0xff]  ;;  %v760_v59 = vld [vmem:[#allocation5 + $0x8] sm:$0xff]  ;;  %s852_s26 = sshll.u32 %s398_s21, 4  ;;  %vm837_vm5 = vcmask 253952   ;;  %s1543_s26 = int_to_ptr.vmem [resolvable:$true] %s852_s26 }
  0x5a   : > { %v404_v15 = vld [vmem:[%s402_s20] sm:$0x7f]  ;;  %s1253_s20 = smov 96   ;;  %v1044_v60 = vpack.c.bf16 %v760_v59, %v759_v58  ;;  %v761_v61 = vld [vmem:[#allocation5 + $0x10] sm:$0xff]  ;;  %s1541_s24 = scalar_lea.hbm %s1595_s10, %s951_s19 }
  0x5b   : > { %1030 = vmatpush3.bf16.msra.mxu0 %v1029_v12  ;;  %v946_v25 = vld [vmem:[%s1590_s5] ss:$0 sm:$0xff]  ;;  %s840_s18 = scalar_lea.sflag [#allocation4], %s1446_s29  ;;  %s1174_s23 = scalar_lea.vmem %s1543_s26, 16 }
  0x5c   : > { %1036 = vmatpush3.bf16.msra.mxu1 %v1035_v13  ;;  %1037 = vmatprep.subr.bf16.mxu0 %v1250_v0  ;;  %v572_v36 = vld [vmem:[%s1594_s9] sm:$0xff]  ;;  %p1175_p6 = scmp.ne.s32.totalorder %s1543_s26, %s1174_s23  ;;  %s1254_s17 = smov [#allocation7]  }
  0x5d   : > { %1009 = vmatprep.subr.mxu1 %v1252_v1  ;;  %v762_v62 = vld [vmem:[#allocation5 + $0x18] sm:$0xff] }
  0x5e   : > { %985 = vmatmul.mubr.msk.f32.vlgmr.msra.gmra.mrb[0].mxu0 %vm410_vm1, %v403_v14  ;;  %v1047_v63 = vpack.c.bf16 %v762_v62, %v761_v61  ;;  %p1176_p8 = pnand %p1175_p6, %p1401_p12 }
  0x5f   : > { %996 = vmatmul.mubr.msk.f32.vlgmr.msra.gmra.mrb[0].mxu1 %vm410_vm1, %v404_v15  ;;  %1006 = vmatprep.mubr.msk.f32.mxu0 %vm1251_vm0, %v1252_v1 }
  0x60   : > { %1011 = vmatprep.mubr.msk.f32.mxu1 %vm1251_vm0, %v1252_v1  ;;  %1039 = vmatpush3.bf16.msra.mxu0 %v1038_v18  ;;  %p1177_p10 = pneg %p1176_p8 }
  0x61   : > { %1040 = vmatprep.subr.bf16.mxu0 %v1250_v0  ;;  %1010 = vmatpush3.msra.mxu1 %v572_v36 }
  0x62   : > { %1043 = vmatprep.subr.bf16.mxu1 %v1250_v0 }
  0x64   : > { %1042 = vmatpush3.bf16.msra.mxu0 %v1041_v21 }
 0x131   : > { %v480_v26 = vpop.f32.mrb[0].mxu0 }
 0x132   : > { %v481_v27 = vadd.f32 %v480_v26, %v409_v24  ;;  %v986_v29 = vpop.f32.mrb[1].mxu0  ;;  %v564_v30 = vpop.f32.mrb[0].mxu1 }
 0x133   : > { %v565_v31 = vadd.f32 %v946_v25, %v564_v30  ;;  %v997_v32 = vpop.f32.mrb[1].mxu1 }
 0x134   : > { %v573_v33 = vmul.f32 0.5, %v481_v27 }
 0x135   : > { %747 = vrot.lane.b32.xlu0 %v565_v31, %s1253_s20  ;;  %s1178_s20 = sshll.u32 %s1254_s17, 4  ;;  %s1179_s20 = int_to_ptr.vmem [resolvable:$false] %s1178_s20 }
 0x136   : > { %v577_v34 = vrot.slane %v573_v33, %v576_v28  ;;  %s1180_s13 = scalar_lea.vmem %s1179_s20, 32  ;;  %p1181_p13 = scmp.lt.s32.totalorder %s1543_s26, %s1179_s20 }
 0x137   : > { %p1182_p3 = scmp.lt.s32.totalorder %s1180_s13, %s1174_s23 }
 0x138   : > { %v578_v35 = vmul.f32 %v577_v34, %v565_v31 }
 0x139   : > { %p1183_p7 = por %p1182_p3, %p1181_p13 }
 0x13a   : > { %1007 = vmatmul.mubr.msk.f32.vlgmr.msra.gmra.mrb[2].mxu0 %vm410_vm1, %v578_v35 }
 0x13b   : > { %p1184_p9 = pnand %p1183_p7, %p1177_p10 }
 0x1a7   : > { %v748_v2 = vpop.permute.xlu0 %747 }
 0x20d   : > { %v648_v37 = vpop.f32.mrb[2].mxu0 }
 0x20e   : > { %v653_v38 = vsel %vm652_vm2, %v648_v37, -inf  ;;  %v1008_v39 = vpop.f32.mrb[3].mxu0 }
 0x20f   : > { %v654_v40 = vrot.slane %v653_v38, 4 }
 0x211   : > { %v655_v41 = vmax.f32 %v653_v38, %v654_v40 }
 0x213   : > { %v656_v42 = vrot.slane %v655_v41, 2 }
 0x215   : > { %v657_v43 = vmax.f32 %v655_v41, %v656_v42 }
 0x217   : > { %v658_v44 = vrot.slane %v657_v43, 1 }
 0x219   : > { %v659_v45 = vmax.f32 %v657_v43, %v658_v44 }
 0x21b   : > { %v660_v46 = vsub.f32 %v648_v37, %v659_v45 }
 0x21d   : > { %v661_v47 = vmul.f32 1.442695, %v660_v46 }
 0x21f   : > { %1112 = vpow2.f32 %v661_v47 }
 0x229   : > { %v1113_v48 = vpop.eup %1112 }
 0x22a   : > { %v663_v49 = vsel %vm652_vm2, %v1113_v48, 0.0 }
 0x22b   : > { %v664_v50 = vrot.slane %v663_v49, 4 }
 0x22d   : > { %v665_v51 = vadd.f32 %v664_v50, %v663_v49 }
 0x22f   : > { %v666_v52 = vrot.slane %v665_v51, 2 }
 0x231   : > { %v667_v53 = vadd.f32 %v666_v52, %v665_v51 }
 0x233   : > { %v668_v54 = vrot.slane %v667_v53, 1 }
 0x235   : > { %v669_v55 = vadd.f32 %v668_v54, %v667_v53 }
 0x237   : > { %1114 = vrcp.f32 %v669_v55 }
 0x241   : > { %v1115_v56 = vpop.eup %1114 }
 0x242   : > { %v671_v57 = vmul.f32 %v1115_v56, %v1113_v48 }
 0x244   : > { %1012 = vmatmul.mubr.msk.f32.vlgmr.msra.gmra.mrb[2].mxu1 %vm672_vm3, %v671_v57 }
 0x245   : > { %1022 = vmatprep.mubr.msk.f32.mxu1 %vm1251_vm0, %v1252_v1  ;;  %1045 = vmatpush3.bf16.msra.mxu1 %v1044_v60 }
 0x246   : > { %1046 = vmatprep.subr.bf16.mxu1 %v1250_v0  ;;  %v763_v0 = vld [vmem:[%s1592_s7] sm:$0x1] }
 0x249   : > { %1048 = vmatpush3.bf16.msra.mxu1 %v1047_v63 }
 0x317   : > { %v742_v3 = vpop.f32.mrb[2].mxu1 }
 0x318   : > { %v750_v4 = vmul.f32 %v748_v2, %v742_v3  ;;  %v1013_v5 = vpop.f32.mrb[3].mxu1 }
 0x31a   : > { %v752_v6 = vsel %vm751_vm4, %v750_v4, 0.0 }
 0x31b   : > { %v753_v7 = vrot.slane %v752_v6, 4 }
 0x31d   : > { %v754_v1 = vadd.f32 %v753_v7, %v752_v6 }
 0x31f   : > { %v755_v8 = vrot.slane %v754_v1, 2 }
 0x321   : > { %v756_v9 = vadd.f32 %v755_v8, %v754_v1 }
 0x323   : > { %v757_v10 = vrot.slane %v756_v9, 1 }
 0x325   : > { %v758_v11 = vadd.f32 %v757_v10, %v756_v9 }
 0x327   : > { %1023 = vmatmul.mubr.msk.f32.vlgmr.msra.gmra.mrb[4].mxu1 %vm410_vm1, %v758_v11 }
 0x3fa   : > { %v833_v12 = vpop.f32.mrb[4].mxu1 }
 0x3fb   : > { %v834_v13 = vadd.f32 %v833_v12, %v763_v0  ;;  %v1024_v14 = vpop.f32.mrb[5].mxu1 }
 0x3fd   : > { %838 = vst.msk [vmem:[%s398_s21] sm:$0x1] %vm837_vm5, %v834_v13 }
 0x3fe   : > { %1187 = shalt.err (!%p1184_p9)
}
 0x3ff   : > { %s1188_s29 = scalar_lea.hbm %s1541_s24, 16  ;;  %s1192_s11 = scalar_lea.hbm %s1595_s10, 32 }
 0x400   : > { %p1189_p2 = scmp.ne.s32.totalorder %s1541_s24, %s1188_s29  ;;  %p1193_p1 = scmp.lt.u32.totalorder %s1541_s24, %s1595_s10 }
 0x401   : > { %p1194_p11 = scmp.lt.u32.totalorder %s1192_s11, %s1188_s29  ;;  %p1196_p6 = scmp.lt.u32.totalorder %s1188_s29, %s1541_s24 }
 0x402   : > { %p1190_p5 = pnand %p1189_p2, %p1401_p12 }
 0x403   : > { %p1195_p4 = por %p1194_p11, %p1193_p1 }
 0x404   : > { %p1191_p0 = pneg %p1190_p5 }
 0x405   : > { %p1197_p8 = por %p1196_p6, %p1195_p4 }
 0x407   : > { %p1198_p10 = pnand %p1197_p8, %p1191_p0 }
 0x409   : > { %1201 = shalt.err (!%p1198_p10)
}
 0x40a   : > { %1055 = dma.vmem_to_hbm [thread:$0]  (%p1401_p12), %s1543_s26, 16, %s1541_s24, %s840_s18  }
 0x40b PF: > { %s1617_s27 = sld [smem:[#allocation11_spill]]  ;;  %s1618_s28 = sld [smem:[#allocation12_spill]] }
 0x40c   : > { %p1620_p3 = scmp.ge.s32.totalorder %s1244_s16, 2 }
 0x411   : > { %s864_s23 = sand.u32 1, %s1617_s27   ;;  %p1619_p13 = scmp.ne.s32.totalorder %s1618_s28, 0 }
 0x412   : > { %s865_s17 = scalar_lea.sflag [#allocation4], %s864_s23 }
 0x413   : > { %p1066_p7 = pnand %p1620_p3, %p1619_p13 }
 0x415   : > { %1227 = dma.done.wait (!%p1066_p7), %s865_s17, 16  }
 0x416   : > { %1229 = vsyncadd (!%p1066_p7), %s865_s17, 4294967280  ;;  %s1621_s16 = sld [smem:[#allocation13_spill]]  ;;  %s1622_s13 = smov %s1236_s14 }
 0x417   : > { %s1623_s14 = smov %s1240_s15  ;;  %s1624_s15 = smov %s1397_s25 }
 0x41c   : > { %p24_p9 = scmp.ge.s32.totalorder %s1621_s16, 4  }
 0x41e   :  { %26 = sbr.rel (!%p24_p9) target bundleno = 6 (0x6), region = 112 }
 0x425   :  { %869 = vsyncpa [#allocation3], 1 }
 0x426   :  { %871 = vsyncpa [#allocation3 + $0x1], 1 }
 0x427   :  { %872 = vsyncpa [#allocation6], 1 }
 0x428   :  { %873 = vsyncpa [#allocation4], 1 }
 0x429   :  { %875 = vsyncpa [#allocation4 + $0x1], 1 }

</bundles_post_ra>
